<compile_context>
chip_gen: v6e
topology: v6e:2x2x1
jax: 0.10.0
libtpu: 0.0.40
codegen_flags: <defaults>
</compile_context>

<pallas_src>
import jax
import jax.numpy as jnp
from jax.experimental import pallas as pl
from jax.experimental.pallas import tpu as pltpu

LANE = 128
SUBLANE = 8


def _round_up(x, m):
    return ((x + m - 1) // m) * m


def _fused_mlp_kernel(x_ref, *refs):
    """refs = (w0, b0, w1, b1, ..., w_{L-1}, b_{L-1}, o_ref).

    The whole layer stack runs on one batch tile: activations stay in VMEM/vregs,
    matmuls hit the MXU with bf16 operands (f32 accumulate), bias + ReLU on the VPU in f32.
    """
    o_ref = refs[-1]
    layer_refs = refs[:-1]
    n_layers = len(layer_refs) // 2

    h = x_ref[...].astype(jnp.bfloat16)                  # bf16 MXU operand
    for l in range(n_layers):                            # static unroll (fixed layer count)
        w = layer_refs[2 * l][...]                       # (P_in, P_out) bf16
        b = layer_refs[2 * l + 1][...]                   # (1, P_out) f32, broadcasts over batch
        y = jnp.dot(h, w, preferred_element_type=jnp.float32)
        a = jnp.maximum(y + b, 0.0)                      # f32 epilogue on the VPU
        if l + 1 < n_layers:
            h = a.astype(jnp.bfloat16)                   # bf16 operand for next layer
        else:
            o_ref[...] = a.astype(o_ref.dtype)


def prepare_params(params, in_dim):
    """One-time padding / packing of parameters (do NOT redo this per forward call).

    Weights are stored [in, out] (already the transpose of PyTorch's Linear.weight) and
    zero-padded to 128-lane multiples, cast to bf16.  Biases stay f32, shape (1, P_out).
    """
    dims = [in_dim] + [w.shape[1] for (w, _) in params]
    pdims = [_round_up(d, LANE) for d in dims]
    prepared = []
    for li, (w, b) in enumerate(params):
        din, dout = w.shape
        wp = (jnp.zeros((pdims[li], pdims[li + 1]), jnp.bfloat16)
              .at[:din, :dout].set(w.astype(jnp.bfloat16)))
        bp = (jnp.zeros((1, pdims[li + 1]), jnp.float32)
              .at[0, :dout].set(b.astype(jnp.float32)))
        prepared.append((wp, bp))
    return prepared, dims, pdims


def deep_forward(x, prepared, dims, pdims, *, batch_tile=1024):
    """Fused MLP forward: x -> ReLU(x @ W0 + b0) -> ... -> ReLU(... @ W_{L-1} + b_{L-1})."""
    B, Din = x.shape
    assert Din == dims[0]

    # Pad only the feature dim (cheap); the batch axis is handled by a ragged grid.
    if pdims[0] != Din:
        xp = jnp.zeros((B, pdims[0]), x.dtype).at[:, :Din].set(x)
    else:
        xp = x

    # Batch tile: multiple of 8 sublanes; aim for >=2 grid steps so v7x's two TensorCores
    # both get work under dimension_semantics=("parallel",).
    if B <= SUBLANE:
        TB = B                                            # block == full batch extent
    else:
        TB = min(batch_tile, max(SUBLANE, _round_up(pl.cdiv(B, 2), SUBLANE)))
    grid = (pl.cdiv(B, TB),)

    flat_inputs = [xp]
    in_specs = [pl.BlockSpec((TB, pdims[0]), lambda i: (i, 0))]
    for wp, bp in prepared:
        flat_inputs.extend([wp, bp])
        # Constant block index + single buffer: weights/biases stay VMEM-resident, one copy.
        in_specs.append(pl.BlockSpec(wp.shape, lambda i: (0, 0),
                                     pipeline_mode=pl.Buffered(1)))
        in_specs.append(pl.BlockSpec(bp.shape, lambda i: (0, 0),
                                     pipeline_mode=pl.Buffered(1)))

    out_spec = pl.BlockSpec((TB, pdims[-1]), lambda i: (i, 0))

    # VMEM budget: single-buffered weights + double-buffered in/out tiles + activation temps.
    w_bytes = sum(int(w.size) * w.dtype.itemsize + int(b.size) * b.dtype.itemsize
                  for (w, b) in prepared)
    io_bytes = 2 * TB * pdims[0] * 4 + 2 * TB * pdims[-1] * 4
    act_bytes = 2 * TB * max(pdims) * (4 + 2)             # f32 + bf16 activation temporaries
    vmem_bytes = int(w_bytes + io_bytes + act_bytes) + (4 << 20)   # headroom
    vmem_bytes = max(16 << 20, min(vmem_bytes, 56 << 20))          # stay inside v7x's 64 MiB

    out = pl.pallas_call(
        _fused_mlp_kernel,
        out_shape=jax.ShapeDtypeStruct((B, pdims[-1]), jnp.float32),
        grid_spec=pl.GridSpec(grid=grid, in_specs=in_specs, out_specs=out_spec),
        compiler_params=pltpu.CompilerParams(
            dimension_semantics=("parallel",),            # batch tiles split across TCs on v7x
            vmem_limit_bytes=vmem_bytes,
        ),
    )(*flat_inputs)

    # Padded output lanes are exact zeros; slice only when the feature dim was padded.
    if pdims[-1] != dims[-1]:
        out = out[:, :dims[-1]]
    return out


def init_deep_params(key, dense_fea_num, sparse_fea_num, k, hidden_layer_list):
    """Xavier-normal weights / zero biases matching Deep.initialize()."""
    layer_list = [sparse_fea_num * k + dense_fea_num] + list(hidden_layer_list)
    params = []
    for din, dout in zip(layer_list[:-1], layer_list[1:]):
        key, wk = jax.random.split(key)
        std = (2.0 / (din + dout)) ** 0.5                 # xavier_normal_, gain=1
        w = std * jax.random.normal(wk, (din, dout), dtype=jnp.float32)
        b = jnp.zeros((dout,), dtype=jnp.float32)
        params.append((w, b))
    return params


if __name__ == "__main__":
    # Small, forward-consistent shapes.
    dense_fea_num = 8
    sparse_fea_num = 4
    k = 6
    hidden_layer_list = [32, 16, 8]
    batch = 2
    in_dim = sparse_fea_num * k + dense_fea_num            # 32

    key = jax.random.PRNGKey(0)
    key, xk = jax.random.split(key)
    x = jax.random.normal(xk, (batch, in_dim), dtype=jnp.float32)

    params = init_deep_params(key, dense_fea_num, sparse_fea_num, k, hidden_layer_list)
    prepared, dims, pdims = prepare_params(params, in_dim)  # one-time pad / bf16 pack

    out = deep_forward(x, prepared, dims, pdims)
    out = jax.block_until_ready(out)

    # Pure-JAX f32 reference of the same math (kernel uses bf16 MXU operands -> loose tol).
    ref = x
    for w, b in params:
        ref = jnp.maximum(ref @ w + b, 0.0)

    assert out.shape == (batch, hidden_layer_list[-1])
    max_err = float(jnp.max(jnp.abs(out - ref)))
    assert jnp.allclose(out, ref, atol=3e-2, rtol=3e-2), f"max abs err {max_err}"

    # TODO(synk): the nn.Embedding tables built in Deep.__init__ are never used in
    # Deep.forward, so no embedding-lookup kernel is implemented here.

    print("KERNEL_OK")
</pallas_src>

<mosaic_0001>
module attributes {stable_mosaic.version = 11 : i64} {
  func.func @_fused_mlp_kernel(%arg0: i32, %arg1: memref<2x128xf32, #tpu.memory_space<vmem>>, %arg2: memref<128x128xbf16, #tpu.memory_space<vmem>>, %arg3: memref<1x128xf32, #tpu.memory_space<vmem>>, %arg4: memref<128x128xbf16, #tpu.memory_space<vmem>>, %arg5: memref<1x128xf32, #tpu.memory_space<vmem>>, %arg6: memref<128x128xbf16, #tpu.memory_space<vmem>>, %arg7: memref<1x128xf32, #tpu.memory_space<vmem>>, %arg8: memref<2x128xf32, #tpu.memory_space<vmem>>) attributes {dimension_semantics = [#tpu.dimension_semantics<parallel>], iteration_bounds = array<i64: 1>, scalar_prefetch = 0 : i64, scratch_operands = 0 : i64, tpu.core_type = #tpu.core_type<tc>, window_params = [{transform_indices = @transform_0, window_bounds = array<i64: 2, 128>}, {pipeline_mode = #tpu.pipeline_mode<synchronous>, transform_indices = @transform_1, window_bounds = array<i64: 128, 128>}, {pipeline_mode = #tpu.pipeline_mode<synchronous>, transform_indices = @transform_2, window_bounds = array<i64: 1, 128>}, {pipeline_mode = #tpu.pipeline_mode<synchronous>, transform_indices = @transform_3, window_bounds = array<i64: 128, 128>}, {pipeline_mode = #tpu.pipeline_mode<synchronous>, transform_indices = @transform_4, window_bounds = array<i64: 1, 128>}, {pipeline_mode = #tpu.pipeline_mode<synchronous>, transform_indices = @transform_5, window_bounds = array<i64: 128, 128>}, {pipeline_mode = #tpu.pipeline_mode<synchronous>, transform_indices = @transform_6, window_bounds = array<i64: 1, 128>}, {transform_indices = @transform_7, window_bounds = array<i64: 2, 128>}]} {
    %c0 = arith.constant 0 : index
    %c0_0 = arith.constant 0 : index
    %0 = vector.load %arg1[%c0, %c0_0] : memref<2x128xf32, #tpu.memory_space<vmem>>, vector<2x128xf32>
    %1 = arith.truncf %0 : vector<2x128xf32> to vector<2x128xbf16>
    %c0_1 = arith.constant 0 : index
    %c0_2 = arith.constant 0 : index
    %2 = vector.load %arg2[%c0_1, %c0_2] : memref<128x128xbf16, #tpu.memory_space<vmem>>, vector<128x128xbf16>
    %c0_3 = arith.constant 0 : index
    %c0_4 = arith.constant 0 : index
    %3 = vector.load %arg3[%c0_3, %c0_4] : memref<1x128xf32, #tpu.memory_space<vmem>>, vector<1x128xf32>
    %cst = arith.constant dense<0.000000e+00> : vector<2x128xf32>
    %4 = tpu.matmul %1, %2, %cst {dimension_numbers = #tpu.dot_dimension_numbers<[1], [0], [0], [1], [0, 0, 1, 1], [], []>} : vector<2x128xbf16>, vector<128x128xbf16>, vector<2x128xf32> -> vector<2x128xf32>
    %5 = vector.broadcast %3 : vector<1x128xf32> to vector<2x128xf32>
    %6 = arith.addf %4, %5 : vector<2x128xf32>
    %cst_5 = arith.constant 0.000000e+00 : f32
    %7 = vector.broadcast %cst_5 : f32 to vector<2x128xf32>
    %8 = arith.maximumf %6, %7 : vector<2x128xf32>
    %9 = arith.truncf %8 : vector<2x128xf32> to vector<2x128xbf16>
    %c0_6 = arith.constant 0 : index
    %c0_7 = arith.constant 0 : index
    %10 = vector.load %arg4[%c0_6, %c0_7] : memref<128x128xbf16, #tpu.memory_space<vmem>>, vector<128x128xbf16>
    %c0_8 = arith.constant 0 : index
    %c0_9 = arith.constant 0 : index
    %11 = vector.load %arg5[%c0_8, %c0_9] : memref<1x128xf32, #tpu.memory_space<vmem>>, vector<1x128xf32>
    %cst_10 = arith.constant dense<0.000000e+00> : vector<2x128xf32>
    %12 = tpu.matmul %9, %10, %cst_10 {dimension_numbers = #tpu.dot_dimension_numbers<[1], [0], [0], [1], [0, 0, 1, 1], [], []>} : vector<2x128xbf16>, vector<128x128xbf16>, vector<2x128xf32> -> vector<2x128xf32>
    %13 = vector.broadcast %11 : vector<1x128xf32> to vector<2x128xf32>
    %14 = arith.addf %12, %13 : vector<2x128xf32>
    %cst_11 = arith.constant 0.000000e+00 : f32
    %15 = vector.broadcast %cst_11 : f32 to vector<2x128xf32>
    %16 = arith.maximumf %14, %15 : vector<2x128xf32>
    %17 = arith.truncf %16 : vector<2x128xf32> to vector<2x128xbf16>
    %c0_12 = arith.constant 0 : index
    %c0_13 = arith.constant 0 : index
    %18 = vector.load %arg6[%c0_12, %c0_13] : memref<128x128xbf16, #tpu.memory_space<vmem>>, vector<128x128xbf16>
    %c0_14 = arith.constant 0 : index
    %c0_15 = arith.constant 0 : index
    %19 = vector.load %arg7[%c0_14, %c0_15] : memref<1x128xf32, #tpu.memory_space<vmem>>, vector<1x128xf32>
    %cst_16 = arith.constant dense<0.000000e+00> : vector<2x128xf32>
    %20 = tpu.matmul %17, %18, %cst_16 {dimension_numbers = #tpu.dot_dimension_numbers<[1], [0], [0], [1], [0, 0, 1, 1], [], []>} : vector<2x128xbf16>, vector<128x128xbf16>, vector<2x128xf32> -> vector<2x128xf32>
    %21 = vector.broadcast %19 : vector<1x128xf32> to vector<2x128xf32>
    %22 = arith.addf %20, %21 : vector<2x128xf32>
    %cst_17 = arith.constant 0.000000e+00 : f32
    %23 = vector.broadcast %cst_17 : f32 to vector<2x128xf32>
    %24 = arith.maximumf %22, %23 : vector<2x128xf32>
    %c0_18 = arith.constant 0 : index
    %c0_19 = arith.constant 0 : index
    %25 = vector.load %arg8[%c0_18, %c0_19] : memref<2x128xf32, #tpu.memory_space<vmem>>, vector<2x128xf32>
    tpu.vector_store %arg8[%c0_18, %c0_19], %24 {strides = array<i32>} : memref<2x128xf32, #tpu.memory_space<vmem>>, vector<2x128xf32>,
    return
  }
  func.func @transform_0(%arg0: i32) -> (i32, i32) {
    %c0_i32 = arith.constant 0 : i32
    %c0_i32_0 = arith.constant 0 : i32
    return %arg0, %c0_i32 : i32, i32
  }
  func.func @transform_1(%arg0: i32) -> (i32, i32) {
    %c0_i32 = arith.constant 0 : i32
    %c0_i32_0 = arith.constant 0 : i32
    %c0_i32_1 = arith.constant 0 : i32
    return %c0_i32, %c0_i32_0 : i32, i32
  }
  func.func @transform_2(%arg0: i32) -> (i32, i32) {
    %c0_i32 = arith.constant 0 : i32
    %c0_i32_0 = arith.constant 0 : i32
    %c0_i32_1 = arith.constant 0 : i32
    return %c0_i32, %c0_i32_0 : i32, i32
  }
  func.func @transform_3(%arg0: i32) -> (i32, i32) {
    %c0_i32 = arith.constant 0 : i32
    %c0_i32_0 = arith.constant 0 : i32
    %c0_i32_1 = arith.constant 0 : i32
    return %c0_i32, %c0_i32_0 : i32, i32
  }
  func.func @transform_4(%arg0: i32) -> (i32, i32) {
    %c0_i32 = arith.constant 0 : i32
    %c0_i32_0 = arith.constant 0 : i32
    %c0_i32_1 = arith.constant 0 : i32
    return %c0_i32, %c0_i32_0 : i32, i32
  }
  func.func @transform_5(%arg0: i32) -> (i32, i32) {
    %c0_i32 = arith.constant 0 : i32
    %c0_i32_0 = arith.constant 0 : i32
    %c0_i32_1 = arith.constant 0 : i32
    return %c0_i32, %c0_i32_0 : i32, i32
  }
  func.func @transform_6(%arg0: i32) -> (i32, i32) {
    %c0_i32 = arith.constant 0 : i32
    %c0_i32_0 = arith.constant 0 : i32
    %c0_i32_1 = arith.constant 0 : i32
    return %c0_i32, %c0_i32_0 : i32, i32
  }
  func.func @transform_7(%arg0: i32) -> (i32, i32) {
    %c0_i32 = arith.constant 0 : i32
    %c0_i32_0 = arith.constant 0 : i32
    return %arg0, %c0_i32 : i32, i32
  }
}

</mosaic_0001>

<bundles_post_ra>
// kernel: tpu_custom_call.1
= control target key start
LH: loop header
LB: loop body
LE: loop exit
PB: predicated region body
PF: predicated region fallthrough
CT: control target
= control target key end

     0   :  { %12 = vsyncpa [#allocation3], 0  ;;  %s806_s0 = inlined_call_operand.hbm [shape: f32[2,128], index: 0, kind: input, shape index: {}]   ;;  %s807_s1 = inlined_call_operand.hbm [shape: bf16[128,128], index: 1, kind: input, shape index: {}]   ;;  %s808_s2 = inlined_call_operand.vmem [shape: f32[1,128], index: 2, kind: input, shape index: {}]   ;;  %s809_s3 = inlined_call_operand.hbm [shape: bf16[128,128], index: 3, kind: input, shape index: {}]   ;;  %s810_s4 = inlined_call_operand.vmem [shape: f32[1,128], index: 4, kind: input, shape index: {}]   ;;  %s811_s5 = inlined_call_operand.hbm [shape: bf16[128,128], index: 5, kind: input, shape index: {}]   ;;  %s812_s6 = inlined_call_operand.vmem [shape: f32[1,128], index: 6, kind: input, shape index: {}]   ;;  %s813_s7 = inlined_call_operand.hbm [shape: f32[2,128], index: 7, kind: output, shape index: {}]  }
   0x1   :  { %13 = vsyncpa [#allocation6], 0 }
   0x2   :  { %14 = vsyncpa [#allocation9], 0 }
   0x3   :  { %15 = vsyncpa [#allocation4], 0  ;;  %s694_s24 = smov [#allocation5]  }
   0x4   :  { %s31_s25 = sshll.u32 %s694_s24, 4  ;;  %s32_s25 = int_to_ptr.vmem [resolvable:$true] %s31_s25 }
   0x5   :  { %s594_s26 = scalar_lea.vmem %s32_s25, 1024  ;;  %p599_p1 = scmp.lt.s32.totalorder %s32_s25, %s32_s25 }
   0x6   :  { %p595_p0 = scmp.ne.s32.totalorder %s32_s25, %s594_s26  ;;  %p600_p2 = scmp.lt.s32.totalorder %s594_s26, %s594_s26 }
   0x8   :  { %p601_p3 = por %p600_p2, %p599_p1 }
   0xa   :  { %p602_p4 = pnand %p601_p3, %p595_p0 }
   0xc   :  { %605 = shalt.err (!%p602_p4)
}
   0xd   :  { %s695_s27 = smov 64   ;;  %s696_s28 = smov 4  }
   0xe   :  { %37 = dma.hbm_to_vmem [thread:$0]  %s807_s1, 1024, %s32_s25, [#allocation6], %s695_s27, %s695_s27, %s696_s28  }
   0xf   :  { %s697_s8 = smov [#allocation2]   ;;  %s698_s10 = smov [#allocation7]  }
  0x10   :  { %s22_s9 = sshll.u32 %s697_s8, 4  ;;  %s45_s11 = sshll.u32 %s698_s10, 4  ;;  %s23_s9 = int_to_ptr.vmem [resolvable:$true] %s22_s9  ;;  %s46_s11 = int_to_ptr.vmem [resolvable:$true] %s45_s11 }
  0x11   :  { %s614_s12 = scalar_lea.vmem %s23_s9, 32  ;;  %p619_p6 = scmp.lt.s32.totalorder %s23_s9, %s23_s9 }
  0x12   :  { %p615_p5 = scmp.ne.s32.totalorder %s23_s9, %s614_s12  ;;  %p620_p7 = scmp.lt.s32.totalorder %s614_s12, %s614_s12 }
  0x14   :  { %p621_p8 = por %p620_p7, %p619_p6 }
  0x16   :  { %p622_p9 = pnand %p621_p8, %p615_p5 }
  0x18   :  { %625 = shalt.err (!%p622_p9)
}
  0x19   :  { %25 = dma.hbm_to_vmem [thread:$0]  %s806_s0, 32, %s23_s9, [#allocation3]  }
  0x1a   :  { %s634_s15 = scalar_lea.vmem %s46_s11, 1024  ;;  %p639_p11 = scmp.lt.s32.totalorder %s46_s11, %s46_s11 }
  0x1b   :  { %p635_p10 = scmp.ne.s32.totalorder %s46_s11, %s634_s15  ;;  %p640_p12 = scmp.lt.s32.totalorder %s634_s15, %s634_s15 }
  0x1d   :  { %p641_p13 = por %p640_p12, %p639_p11 }
  0x1f   :  { %p642_p0 = pnand %p641_p13, %p635_p10 }
  0x21   :  { %645 = shalt.err (!%p642_p0)
}
  0x22   :  { %51 = dma.hbm_to_vmem [thread:$0]  %s809_s3, 1024, %s46_s11, [#allocation6], %s695_s27, %s695_s27, %s696_s28  }
  0x23   :  { %s699_s17 = smov [#allocation8]  }
  0x24   :  { %s59_s18 = sshll.u32 %s699_s17, 4  ;;  %s60_s18 = int_to_ptr.vmem [resolvable:$true] %s59_s18 }
  0x25   :  { %s654_s19 = scalar_lea.vmem %s60_s18, 1024  ;;  %p659_p2 = scmp.lt.s32.totalorder %s60_s18, %s60_s18 }
  0x26   :  { %p655_p1 = scmp.ne.s32.totalorder %s60_s18, %s654_s19  ;;  %p660_p3 = scmp.lt.s32.totalorder %s654_s19, %s654_s19 }
  0x28   :  { %p661_p4 = por %p660_p3, %p659_p2 }
  0x2a   :  { %p662_p5 = pnand %p661_p4, %p655_p1 }
  0x2c   :  { %665 = shalt.err (!%p662_p5)
}
  0x2d   :  { %65 = dma.hbm_to_vmem [thread:$0]  %s811_s5, 1024, %s60_s18, [#allocation9], %s695_s27, %s695_s27, %s696_s28  }
  0x2e   :  { %686 = dma.done.wait [#allocation3], 32  }
  0x2f   :  { %687 = vsyncadd [#allocation3], 4294967264 }
  0x30   :  { %688 = dma.done.wait [#allocation6], 2048  }
  0x31   :  { %689 = vsyncadd [#allocation6], 4294965248 }
  0x32   :  { %690 = dma.done.wait [#allocation9], 1024  }
  0x33   :  { %691 = vsyncadd [#allocation9], 4294966272  ;;  %v700_v0 = vmov 0.0   ;;  %vm701_vm0 = vmmov 0   ;;  %v562_v1 = vld [vmem:[#allocation5 + $0x38] sm:$0xff]   ;;  %v563_v2 = vld [vmem:[#allocation5 + $0x30] sm:$0xff]  }
  0x34   :  { %493 = vmatprep.subr.bf16.mxu0 %v700_v0  ;;  %509 = vmatprep.mubr.msk.bf16.mxu0 %vm701_vm0, %v700_v0  ;;  %v564_v3 = vld [vmem:[#allocation5 + $0x28] sm:$0xff]   ;;  %v570_v4 = vld [vmem:[#allocation7 + $0x38] sm:$0xff]   ;;  %v565_v5 = vld [vmem:[#allocation5 + $0x20] sm:$0xff]   ;;  %s702_s24 = smov [#allocation10]  }
  0x35   :  { %513 = vmatprep.subr.bf16.mxu1 %v700_v0  ;;  %529 = vmatprep.mubr.msk.bf16.mxu1 %vm701_vm0, %v700_v0  ;;  %v571_v6 = vld [vmem:[#allocation7 + $0x30] sm:$0xff]   ;;  %v566_v7 = vld [vmem:[#allocation5 + $0x18] sm:$0xff]   ;;  %v572_v8 = vld [vmem:[#allocation7 + $0x28] sm:$0xff]   ;;  %s428_s25 = sshll.u32 %s702_s24, 4  ;;  %s429_s25 = int_to_ptr.vmem [resolvable:$true] %s428_s25 }
  0x36   :  { %494 = vmatpush3.bf16.msra.mxu0 %v562_v1  ;;  %514 = vmatpush3.bf16.msra.mxu1 %v570_v4  ;;  %v567_v9 = vld [vmem:[#allocation5 + $0x10] sm:$0xff]   ;;  %v573_v10 = vld [vmem:[#allocation7 + $0x20] sm:$0xff]   ;;  %v568_v11 = vld [vmem:[#allocation5 + $0x8] sm:$0xff]   ;;  %p671_p7 = scmp.lt.s32.totalorder %s429_s25, %s429_s25 }
  0x37   :  { %495 = vmatprep.subr.bf16.mxu0 %v700_v0  ;;  %515 = vmatprep.subr.bf16.mxu1 %v700_v0  ;;  %v574_v12 = vld [vmem:[#allocation7 + $0x18] sm:$0xff]   ;;  %v569_v13 = vld [vmem:[#allocation5] sm:$0xff]   ;;  %v575_v15 = vld [vmem:[#allocation7 + $0x10] sm:$0xff]  }
  0x38   :  { %v81_v14 = vld [vmem:[#allocation2] sm:$0x3]  ;;  %v576_v17 = vld [vmem:[#allocation7 + $0x8] sm:$0xff]   ;;  %v577_v18 = vld [vmem:[#allocation7] sm:$0xff]  }
  0x39   :  { %v82_v16 = vpack.c.bf16 %v81_v14, %v81_v14  ;;  %v578_v19 = vld [vmem:[#allocation8 + $0x38] sm:$0xff]   ;;  %v579_v20 = vld [vmem:[#allocation8 + $0x30] sm:$0xff]   ;;  %v580_v21 = vld [vmem:[#allocation8 + $0x28] sm:$0xff]  }
  0x3a   :  { %496 = vmatpush3.bf16.msra.mxu0 %v563_v2  ;;  %516 = vmatpush3.bf16.msra.mxu1 %v571_v6  ;;  %v581_v22 = vld [vmem:[#allocation8 + $0x20] sm:$0xff]   ;;  %v582_v23 = vld [vmem:[#allocation8 + $0x18] sm:$0xff]   ;;  %v583_v24 = vld [vmem:[#allocation8 + $0x10] sm:$0xff]  }
  0x3b   :  { %497 = vmatprep.subr.bf16.mxu0 %v700_v0  ;;  %517 = vmatprep.subr.bf16.mxu1 %v700_v0  ;;  %v439_v25 = vld [vmem:[%s808_s2] ss:$0 sm:$0xff]  ;;  %v584_v33 = vld [vmem:[#allocation8 + $0x8] sm:$0xff]   ;;  %v585_v34 = vld [vmem:[#allocation8] sm:$0xff]  }
  0x3c   :  { %v448_v35 = vld [vmem:[%s810_s4] ss:$0 sm:$0xff]  ;;  %s666_s4 = scalar_lea.vmem %s429_s25, 32 }
  0x3d   :  { %v457_v43 = vld [vmem:[%s812_s6] ss:$0 sm:$0xff]  ;;  %p667_p6 = scmp.ne.s32.totalorder %s429_s25, %s666_s4  ;;  %p672_p8 = scmp.lt.s32.totalorder %s666_s4, %s666_s4 }
  0x3e   :  { %498 = vmatpush3.bf16.msra.mxu0 %v564_v3  ;;  %518 = vmatpush3.bf16.msra.mxu1 %v572_v8 }
  0x3f   :  { %499 = vmatprep.subr.bf16.mxu0 %v700_v0  ;;  %519 = vmatprep.subr.bf16.mxu1 %v700_v0  ;;  %p673_p9 = por %p672_p8, %p671_p7 }
  0x41   :  { %p674_p10 = pnand %p673_p9, %p667_p6 }
  0x42   :  { %500 = vmatpush3.bf16.msra.mxu0 %v565_v5  ;;  %520 = vmatpush3.bf16.msra.mxu1 %v573_v10 }
  0x43   :  { %501 = vmatprep.subr.bf16.mxu0 %v700_v0  ;;  %521 = vmatprep.subr.bf16.mxu1 %v700_v0 }
  0x46   :  { %502 = vmatpush3.bf16.msra.mxu0 %v566_v7  ;;  %522 = vmatpush3.bf16.msra.mxu1 %v574_v12 }
  0x47   :  { %503 = vmatprep.subr.bf16.mxu0 %v700_v0  ;;  %523 = vmatprep.subr.bf16.mxu1 %v700_v0 }
  0x4a   :  { %504 = vmatpush3.bf16.msra.mxu0 %v567_v9  ;;  %524 = vmatpush3.bf16.msra.mxu1 %v575_v15 }
  0x4b   :  { %505 = vmatprep.subr.bf16.mxu0 %v700_v0  ;;  %525 = vmatprep.subr.bf16.mxu1 %v700_v0 }
  0x4e   :  { %506 = vmatpush3.bf16.msra.mxu0 %v568_v11  ;;  %526 = vmatpush3.bf16.msra.mxu1 %v576_v17 }
  0x4f   :  { %507 = vmatprep.subr.bf16.mxu0 %v700_v0  ;;  %527 = vmatprep.subr.bf16.mxu1 %v700_v0 }
  0x52   :  { %508 = vmatpush3.bf16.msra.mxu0 %v569_v13  ;;  %528 = vmatpush3.bf16.msra.mxu1 %v577_v18 }
  0x53   :  { %533 = vmatprep.subr.bf16.mxu0 %v700_v0 }
  0x55   :  { %510 = vmatmul.mubr.bf16.vlgmr.msra.gmra.mxu0 %v82_v16 }
  0x56   :  { %549 = vmatprep.mubr.msk.bf16.mxu0 %vm701_vm0, %v700_v0  ;;  %534 = vmatpush3.bf16.msra.mxu0 %v578_v19 }
  0x57   :  { %535 = vmatprep.subr.bf16.mxu0 %v700_v0 }
  0x5a   :  { %536 = vmatpush3.bf16.msra.mxu0 %v579_v20 }
  0x5b   :  { %537 = vmatprep.subr.bf16.mxu0 %v700_v0 }
  0x5e   :  { %538 = vmatpush3.bf16.msra.mxu0 %v580_v21 }
  0x5f   :  { %539 = vmatprep.subr.bf16.mxu0 %v700_v0 }
  0x62   :  { %540 = vmatpush3.bf16.msra.mxu0 %v581_v22 }
  0x63   :  { %541 = vmatprep.subr.bf16.mxu0 %v700_v0 }
  0x66   :  { %542 = vmatpush3.bf16.msra.mxu0 %v582_v23 }
  0x67   :  { %543 = vmatprep.subr.bf16.mxu0 %v700_v0 }
  0x6a   :  { %544 = vmatpush3.bf16.msra.mxu0 %v583_v24 }
  0x6b   :  { %545 = vmatprep.subr.bf16.mxu0 %v700_v0 }
  0x6e   :  { %546 = vmatpush3.bf16.msra.mxu0 %v584_v33 }
  0x6f   :  { %547 = vmatprep.subr.bf16.mxu0 %v700_v0 }
  0x72   :  { %548 = vmatpush3.bf16.msra.mxu0 %v585_v34 }
 0x115   :  { %v188_v26 = vpop.f32.mrf.mxu0 }
 0x116   :  { %v189_v27 = vadd.f32 %v439_v25, %v188_v26 }
 0x117   :  { %v511_v28 = vpop.f32.mrf.mxu0 }
 0x118   :  { %v194_v29 = vmax.f32 %v189_v27, 0.0 }
 0x119   :  { %v191_v30 = vpop.f32.mrf.mxu0 }
 0x11a   :  { %v195_v31 = vpack.c.bf16 %v194_v29, %v194_v29 }
 0x11b   :  { %v512_v32 = vpop.f32.mrf.mxu0 }
 0x11c   :  { %530 = vmatmul.mubr.bf16.vlgmr.msra.gmra.mxu1 %v195_v31 }
 0x1dc   :  { %v301_v36 = vpop.f32.mrf.mxu1 }
 0x1dd   :  { %v302_v37 = vadd.f32 %v448_v35, %v301_v36 }
 0x1de   :  { %v531_v38 = vpop.f32.mrf.mxu1 }
 0x1df   :  { %v307_v39 = vmax.f32 %v302_v37, 0.0 }
 0x1e0   :  { %v304_v40 = vpop.f32.mrf.mxu1 }
 0x1e1   :  { %v308_v41 = vpack.c.bf16 %v307_v39, %v307_v39 }
 0x1e2   :  { %v532_v42 = vpop.f32.mrf.mxu1 }
 0x1e3   :  { %550 = vmatmul.mubr.bf16.vlgmr.msra.gmra.mxu0 %v308_v41 }
 0x2a3   :  { %v414_v44 = vpop.f32.mrf.mxu0 }
 0x2a4   :  { %v415_v45 = vadd.f32 %v457_v43, %v414_v44 }
 0x2a5   :  { %v551_v46 = vpop.f32.mrf.mxu0 }
 0x2a6   :  { %v420_v47 = vmax.f32 %v415_v45, 0.0 }
 0x2a7   :  { %v417_v48 = vpop.f32.mrf.mxu0 }
 0x2a8   :  { %421 = vst [vmem:[#allocation10] sm:$0x3] %v420_v47 }
 0x2a9   :  { %v552_v49 = vpop.f32.mrf.mxu0 }
 0x2aa   :  { %677 = shalt.err (!%p674_p10)
}
 0x2ab   :  { %431 = dma.vmem_to_hbm [thread:$0]  %s429_s25, 32, %s813_s7, [#allocation4]  }
 0x2ac   :  { %692 = dma.done.wait [#allocation4], 32  }
 0x2ad   :  { %693 = vsyncadd [#allocation4], 4294967264 }
 0x2ae   :  { %435 = vsyncpa [#allocation3], 1 }
 0x2af   :  { %436 = vsyncpa [#allocation6], 1 }
 0x2b0   :  { %437 = vsyncpa [#allocation9], 1 }
 0x2b1   :  { %438 = vsyncpa [#allocation4], 1 }

</bundles_post_ra>
